<compile_context>
chip_gen: v7x
topology: tpu7x:2x2x1
jax: 0.10.0
libtpu: 0.0.40
codegen_flags: <defaults>
</compile_context>

<pallas_src>
import math

import jax
import jax.numpy as jnp
import numpy as np
from jax import lax
from jax.experimental import pallas as pl
from jax.experimental.pallas import tpu as pltpu

# ----------------------- small config consistent with the module ------------------------------
HIDDEN = 64            # hidden_size
NUM_HEADS = 2
EXPAND = 32            # expand_ratio  -> head_f_dim
NUM_KV = 1             # num_key_value_heads
HEAD_F = EXPAND                    # q/k head dim
HEAD_I = HIDDEN // NUM_HEADS       # value ("input") head dim
FORGET_DIM = NUM_HEADS * HEAD_F    # 64
K_DIM = NUM_KV * HEAD_F            # 32
I_DIM = NUM_KV * HEAD_I            # 32
PROJ_DIM = FORGET_DIM + K_DIM + I_DIM   # 128 -> exactly one vreg lane width
N_REP = NUM_HEADS // NUM_KV
NORM_EPS = 1e-5
B, L = 2, 8
BL = B * L
SCALE = HEAD_F ** -0.5             # fla fused_recurrent_gla / chunk_gla default scale


def _block_causal_mask():
    """(BL, BL) block-diagonal causal mask (batches are stacked along rows)."""
    t = np.arange(BL)
    same_batch = (t[:, None] // L) == (t[None, :] // L)
    causal = t[:, None] >= t[None, :]
    return (same_batch & causal).astype(np.float32)


_MASK_NP = _block_causal_mask()


# ----------------------------------- fused Pallas kernel --------------------------------------
def _hgrn2_fused_kernel(x_ref, wqki_ref, mask_ref, gw_ref, wo_ref, o_ref):
    # --- fused q/k/i projection: one MXU pass, 128-lane-wide result -------------------------
    x = x_ref[...]                                                        # (BL, HIDDEN)
    proj = jnp.dot(x, wqki_ref[...], preferred_element_type=jnp.float32)  # (BL, 128)

    # static column split (q | k | i); activations applied once on full blocks
    q_all = jnp.maximum(proj[:, :FORGET_DIM], 0.0) * SCALE                # relu + scale, (BL, 64)
    k_sig = jax.nn.sigmoid(proj[:, FORGET_DIM:FORGET_DIM + K_DIM])        # (BL, 32) shared kv head
    i_all = proj[:, FORGET_DIM + K_DIM:]                                  # (BL, 32)

    # --- chunked GLA (zero initial state) over the whole (B*L) slab --------------------------
    mask_f = mask_ref[...]                                                # (BL, BL) block-diag causal
    g_log = jnp.log(1.0 - k_sig)                                          # log decay = log(1 - sigmoid)
    # inclusive cumulative log-decay per batch via triangular matmul (per-batch cumsum)
    G = jnp.dot(mask_f, g_log, preferred_element_type=jnp.float32)        # (BL, 32)
    lam = jnp.exp(G)                                                      # Λ_t
    k_m = k_sig * jnp.exp(-G)                                             # k_s / Λ_s

    outs = []
    for h in range(NUM_HEADS):                                            # static unroll (2 heads)
        q_h = q_all[:, h * HEAD_F:(h + 1) * HEAD_F] * lam                 # (BL, 32)
        # A[t, s] = Σ_k q_t[k] Λ_t[k] k_s[k] / Λ_s[k]  (s <= t, same batch)
        a = lax.dot_general(q_h, k_m, (((1,), (1,)), ((), ())),
                            preferred_element_type=jnp.float32)           # (BL, BL)
        outs.append(jnp.dot(a * mask_f, i_all,
                            preferred_element_type=jnp.float32))          # (BL, 32)
    o_gla = jnp.concatenate(outs, axis=-1)                                # (BL, HIDDEN) = b l (h d)

    # --- fused RMSNorm (elementwise affine) + output projection ------------------------------
    var = jnp.mean(o_gla * o_gla, axis=-1, keepdims=True)
    on = o_gla * lax.rsqrt(var + NORM_EPS) * gw_ref[...]                  # (BL, HIDDEN)
    o_ref[...] = jnp.dot(on, wo_ref[...], preferred_element_type=jnp.float32)


# ------------------------------------- forward glue -------------------------------------------
def hgrn2_attention_forward(hidden, wq, wk, wi, wo, g_norm_w):
    x2d = hidden.reshape(BL, HIDDEN)
    # concatenated projection weight (HIDDEN, 128): [Wq^T | Wk^T | Wi^T]
    w_qki = jnp.concatenate([wq.T, wk.T, wi.T], axis=1)
    mask = jnp.asarray(_MASK_NP)
    out = pl.pallas_call(
        _hgrn2_fused_kernel,
        out_shape=jax.ShapeDtypeStruct((BL, HIDDEN), jnp.float32),
        grid=(1,),
        in_specs=[pl.BlockSpec((BL, HIDDEN), lambda i: (0, 0)),
                  pl.BlockSpec((HIDDEN, PROJ_DIM), lambda i: (0, 0)),
                  pl.BlockSpec((BL, BL), lambda i: (0, 0)),
                  pl.BlockSpec((1, HIDDEN), lambda i: (0, 0)),
                  pl.BlockSpec((HIDDEN, HIDDEN), lambda i: (0, 0))],
        out_specs=pl.BlockSpec((BL, HIDDEN), lambda i: (0, 0)),
    )(x2d, w_qki, mask, g_norm_w.reshape(1, HIDDEN), wo.T)
    return out.reshape(B, L, HIDDEN)


# ------------------------------------ pure-JAX reference --------------------------------------
def reference(hidden, wq, wk, wi, wo, g_norm_w):
    q = hidden @ wq.T
    k = hidden @ wk.T
    i = hidden @ wi.T
    q = q.reshape(B, L, NUM_HEADS, HEAD_F).transpose(0, 2, 1, 3)
    k = k.reshape(B, L, NUM_KV, HEAD_F).transpose(0, 2, 1, 3)
    i = i.reshape(B, L, NUM_KV, HEAD_I).transpose(0, 2, 1, 3)
    k = jnp.repeat(k, N_REP, axis=1)      # repeat_kv (repeat_interleave along heads)
    i = jnp.repeat(i, N_REP, axis=1)
    q = jax.nn.relu(q)
    ks = jax.nn.sigmoid(k.astype(jnp.float32))
    g = jnp.log1p(-ks)                    # log(1 - sigmoid(k))

    def step(h, inp):
        q_t, k_t, i_t, g_t = inp          # each (B, H, D*)
        h = h * jnp.exp(g_t)[..., None] + k_t[..., None] * i_t[..., None, :]
        o_t = jnp.einsum('bhk,bhkv->bhv', q_t * SCALE, h)
        return h, o_t

    h0 = jnp.zeros((B, NUM_HEADS, HEAD_F, HEAD_I), jnp.float32)
    _, o = lax.scan(step, h0, (q.transpose(2, 0, 1, 3), ks.transpose(2, 0, 1, 3),
                               i.transpose(2, 0, 1, 3), g.transpose(2, 0, 1, 3)))
    o = o.transpose(1, 0, 2, 3).reshape(B, L, HIDDEN)         # b l (h d)
    var = jnp.mean(o * o, axis=-1, keepdims=True)
    on = o * lax.rsqrt(var + NORM_EPS) * g_norm_w
    return on @ wo.T


# ---------------------------------------- main -------------------------------------------------
if __name__ == "__main__":
    key = jax.random.PRNGKey(0)
    k0, k1, k2, k3, k4 = jax.random.split(key, 5)
    gain = 2 ** (-2.5)

    def xavier(k, out_f, in_f):
        bound = gain * math.sqrt(6.0 / (in_f + out_f))
        return jax.random.uniform(k, (out_f, in_f), jnp.float32, -bound, bound)

    wq = xavier(k0, FORGET_DIM, HIDDEN)            # q_proj.weight
    wk = xavier(k1, K_DIM, HIDDEN)                 # k_proj.weight
    wi = xavier(k2, I_DIM, HIDDEN)                 # i_proj.weight
    wo = xavier(k3, HIDDEN, HIDDEN)                # o_proj.weight
    g_norm_w = jnp.ones((HIDDEN,), jnp.float32)    # RMSNorm weight (elementwise_affine)

    hidden_states = jax.random.normal(k4, (B, L, HIDDEN), jnp.float32)

    out = hgrn2_attention_forward(hidden_states, wq, wk, wi, wo, g_norm_w)
    jax.block_until_ready(out)

    ref = reference(hidden_states, wq, wk, wi, wo, g_norm_w)
    np.testing.assert_allclose(np.asarray(out), np.asarray(ref), rtol=2e-3, atol=2e-3)

    # TODO(synk): use_short_conv / cache (past_key_values) / attention_mask / lower_bound paths
    # are not exercised by this synthetic forward (module defaults / prefill with no mask).
    print("KERNEL_OK")
</pallas_src>

<mosaic_0001>
module attributes {stable_mosaic.version = 11 : i64} {
  func.func @_hgrn2_fused_kernel(%arg0: i32, %arg1: memref<16x64xf32, #tpu.memory_space<vmem>>, %arg2: memref<64x128xf32, #tpu.memory_space<vmem>>, %arg3: memref<16x16xf32, #tpu.memory_space<vmem>>, %arg4: memref<1x64xf32, #tpu.memory_space<vmem>>, %arg5: memref<64x64xf32, #tpu.memory_space<vmem>>, %arg6: memref<16x64xf32, #tpu.memory_space<vmem>>) attributes {dimension_semantics = [#tpu.dimension_semantics<arbitrary>], iteration_bounds = array<i64: 1>, scalar_prefetch = 0 : i64, scratch_operands = 0 : i64, tpu.core_type = #tpu.core_type<tc>, window_params = [{pipeline_mode = #tpu.pipeline_mode<synchronous>, transform_indices = @transform_0, window_bounds = array<i64: 16, 64>}, {pipeline_mode = #tpu.pipeline_mode<synchronous>, transform_indices = @transform_1, window_bounds = array<i64: 64, 128>}, {pipeline_mode = #tpu.pipeline_mode<synchronous>, transform_indices = @transform_2, window_bounds = array<i64: 16, 16>}, {pipeline_mode = #tpu.pipeline_mode<synchronous>, transform_indices = @transform_3, window_bounds = array<i64: 1, 64>}, {pipeline_mode = #tpu.pipeline_mode<synchronous>, transform_indices = @transform_4, window_bounds = array<i64: 64, 64>}, {pipeline_mode = #tpu.pipeline_mode<synchronous>, transform_indices = @transform_5, window_bounds = array<i64: 16, 64>}]} {
    %c0 = arith.constant 0 : index
    %c0_0 = arith.constant 0 : index
    %0 = vector.load %arg1[%c0, %c0_0] : memref<16x64xf32, #tpu.memory_space<vmem>>, vector<16x64xf32>
    %c0_1 = arith.constant 0 : index
    %c0_2 = arith.constant 0 : index
    %1 = vector.load %arg2[%c0_1, %c0_2] : memref<64x128xf32, #tpu.memory_space<vmem>>, vector<64x128xf32>
    %cst = arith.constant dense<0.000000e+00> : vector<16x128xf32>
    %2 = tpu.matmul %0, %1, %cst {dimension_numbers = #tpu.dot_dimension_numbers<[1], [0], [0], [1], [0, 0, 1, 1], [], []>} : vector<16x64xf32>, vector<64x128xf32>, vector<16x128xf32> -> vector<16x128xf32>
    %3 = vector.extract_strided_slice %2 {offsets = [0, 0], sizes = [16, 64], strides = [1, 1]} : vector<16x128xf32> to vector<16x64xf32>
    %cst_3 = arith.constant 0.000000e+00 : f32
    %4 = vector.broadcast %cst_3 : f32 to vector<16x64xf32>
    %5 = arith.maximumf %3, %4 : vector<16x64xf32>
    %cst_4 = arith.constant 0.176776692 : f32
    %6 = vector.broadcast %cst_4 : f32 to vector<16x64xf32>
    %7 = arith.mulf %5, %6 : vector<16x64xf32>
    %8 = vector.extract_strided_slice %2 {offsets = [0, 64], sizes = [16, 32], strides = [1, 1]} : vector<16x128xf32> to vector<16x32xf32>
    %9 = arith.negf %8 : vector<16x32xf32>
    %10 = math.exp %9 : vector<16x32xf32>
    %cst_5 = arith.constant 1.000000e+00 : f32
    %11 = vector.broadcast %cst_5 : f32 to vector<16x32xf32>
    %12 = arith.addf %11, %10 : vector<16x32xf32>
    %13 = arith.divf %11, %12 : vector<16x32xf32>
    %14 = vector.extract_strided_slice %2 {offsets = [0, 96], sizes = [16, 32], strides = [1, 1]} : vector<16x128xf32> to vector<16x32xf32>
    %c0_6 = arith.constant 0 : index
    %c0_7 = arith.constant 0 : index
    %15 = vector.load %arg3[%c0_6, %c0_7] : memref<16x16xf32, #tpu.memory_space<vmem>>, vector<16x16xf32>
    %cst_8 = arith.constant 1.000000e+00 : f32
    %16 = vector.broadcast %cst_8 : f32 to vector<16x32xf32>
    %17 = arith.subf %16, %13 : vector<16x32xf32>
    %18 = math.log %17 : vector<16x32xf32>
    %cst_9 = arith.constant dense<0.000000e+00> : vector<16x32xf32>
    %19 = tpu.matmul %15, %18, %cst_9 {dimension_numbers = #tpu.dot_dimension_numbers<[1], [0], [0], [1], [0, 0, 1, 1], [], []>} : vector<16x16xf32>, vector<16x32xf32>, vector<16x32xf32> -> vector<16x32xf32>
    %20 = math.exp %19 : vector<16x32xf32>
    %cst_10 = arith.constant 0.000000e+00 : f32
    %21 = vector.broadcast %cst_10 : f32 to vector<16x32xf32>
    %22 = arith.subf %21, %19 : vector<16x32xf32>
    %23 = math.exp %22 : vector<16x32xf32>
    %24 = arith.mulf %13, %23 : vector<16x32xf32>
    %25 = vector.extract_strided_slice %7 {offsets = [0, 0], sizes = [16, 32], strides = [1, 1]} : vector<16x64xf32> to vector<16x32xf32>
    %26 = arith.mulf %25, %20 : vector<16x32xf32>
    %cst_11 = arith.constant dense<0.000000e+00> : vector<16x16xf32>
    %27 = tpu.matmul %26, %24, %cst_11 {dimension_numbers = #tpu.dot_dimension_numbers<[1], [1], [0], [0], [0, 0, 1, 0], [], []>} : vector<16x32xf32>, vector<16x32xf32>, vector<16x16xf32> -> vector<16x16xf32>
    %28 = arith.mulf %27, %15 : vector<16x16xf32>
    %cst_12 = arith.constant dense<0.000000e+00> : vector<16x32xf32>
    %29 = tpu.matmul %28, %14, %cst_12 {dimension_numbers = #tpu.dot_dimension_numbers<[1], [0], [0], [1], [0, 0, 1, 1], [], []>} : vector<16x16xf32>, vector<16x32xf32>, vector<16x32xf32> -> vector<16x32xf32>
    %30 = vector.extract_strided_slice %7 {offsets = [0, 32], sizes = [16, 32], strides = [1, 1]} : vector<16x64xf32> to vector<16x32xf32>
    %31 = arith.mulf %30, %20 : vector<16x32xf32>
    %cst_13 = arith.constant dense<0.000000e+00> : vector<16x16xf32>
    %32 = tpu.matmul %31, %24, %cst_13 {dimension_numbers = #tpu.dot_dimension_numbers<[1], [1], [0], [0], [0, 0, 1, 0], [], []>} : vector<16x32xf32>, vector<16x32xf32>, vector<16x16xf32> -> vector<16x16xf32>
    %33 = arith.mulf %32, %15 : vector<16x16xf32>
    %cst_14 = arith.constant dense<0.000000e+00> : vector<16x32xf32>
    %34 = tpu.matmul %33, %14, %cst_14 {dimension_numbers = #tpu.dot_dimension_numbers<[1], [0], [0], [1], [0, 0, 1, 1], [], []>} : vector<16x16xf32>, vector<16x32xf32>, vector<16x32xf32> -> vector<16x32xf32>
    %35 = tpu.concatenate %29, %34 in 1 : vector<16x32xf32>, vector<16x32xf32> -> vector<16x64xf32>
    %36 = arith.mulf %35, %35 : vector<16x64xf32>
    %cst_15 = arith.constant dense<0.000000e+00> : vector<16xf32>
    %37 = vector.multi_reduction <add>, %36, %cst_15 [1] : vector<16x64xf32> to vector<16xf32>
    %38 = vector.shape_cast %37 : vector<16xf32> to vector<16x1xf32>
    %cst_16 = arith.constant 6.400000e+01 : f32
    %39 = vector.broadcast %cst_16 : f32 to vector<16x1xf32>
    %40 = arith.divf %38, %39 : vector<16x1xf32>
    %cst_17 = arith.constant 9.99999974E-6 : f32
    %41 = vector.broadcast %cst_17 : f32 to vector<16x1xf32>
    %42 = arith.addf %40, %41 : vector<16x1xf32>
    %43 = math.rsqrt %42 : vector<16x1xf32>
    %44 = vector.broadcast %43 : vector<16x1xf32> to vector<16x64xf32>
    %45 = arith.mulf %35, %44 : vector<16x64xf32>
    %c0_18 = arith.constant 0 : index
    %c0_19 = arith.constant 0 : index
    %46 = vector.load %arg4[%c0_18, %c0_19] : memref<1x64xf32, #tpu.memory_space<vmem>>, vector<1x64xf32>
    %47 = vector.broadcast %46 : vector<1x64xf32> to vector<16x64xf32>
    %48 = arith.mulf %45, %47 : vector<16x64xf32>
    %c0_20 = arith.constant 0 : index
    %c0_21 = arith.constant 0 : index
    %49 = vector.load %arg5[%c0_20, %c0_21] : memref<64x64xf32, #tpu.memory_space<vmem>>, vector<64x64xf32>
    %cst_22 = arith.constant dense<0.000000e+00> : vector<16x64xf32>
    %50 = tpu.matmul %48, %49, %cst_22 {dimension_numbers = #tpu.dot_dimension_numbers<[1], [0], [0], [1], [0, 0, 1, 1], [], []>} : vector<16x64xf32>, vector<64x64xf32>, vector<16x64xf32> -> vector<16x64xf32>
    %c0_23 = arith.constant 0 : index
    %c0_24 = arith.constant 0 : index
    %51 = vector.load %arg6[%c0_23, %c0_24] : memref<16x64xf32, #tpu.memory_space<vmem>>, vector<16x64xf32>
    tpu.vector_store %arg6[%c0_23, %c0_24], %50 {strides = array<i32>} : memref<16x64xf32, #tpu.memory_space<vmem>>, vector<16x64xf32>,
    return
  }
  func.func @transform_0(%arg0: i32) -> (i32, i32) {
    %c0_i32 = arith.constant 0 : i32
    %c0_i32_0 = arith.constant 0 : i32
    %c0_i32_1 = arith.constant 0 : i32
    return %c0_i32, %c0_i32_0 : i32, i32
  }
  func.func @transform_1(%arg0: i32) -> (i32, i32) {
    %c0_i32 = arith.constant 0 : i32
    %c0_i32_0 = arith.constant 0 : i32
    %c0_i32_1 = arith.constant 0 : i32
    return %c0_i32, %c0_i32_0 : i32, i32
  }
  func.func @transform_2(%arg0: i32) -> (i32, i32) {
    %c0_i32 = arith.constant 0 : i32
    %c0_i32_0 = arith.constant 0 : i32
    %c0_i32_1 = arith.constant 0 : i32
    return %c0_i32, %c0_i32_0 : i32, i32
  }
  func.func @transform_3(%arg0: i32) -> (i32, i32) {
    %c0_i32 = arith.constant 0 : i32
    %c0_i32_0 = arith.constant 0 : i32
    %c0_i32_1 = arith.constant 0 : i32
    return %c0_i32, %c0_i32_0 : i32, i32
  }
  func.func @transform_4(%arg0: i32) -> (i32, i32) {
    %c0_i32 = arith.constant 0 : i32
    %c0_i32_0 = arith.constant 0 : i32
    %c0_i32_1 = arith.constant 0 : i32
    return %c0_i32, %c0_i32_0 : i32, i32
  }
  func.func @transform_5(%arg0: i32) -> (i32, i32) {
    %c0_i32 = arith.constant 0 : i32
    %c0_i32_0 = arith.constant 0 : i32
    %c0_i32_1 = arith.constant 0 : i32
    return %c0_i32, %c0_i32_0 : i32, i32
  }
}

</mosaic_0001>

<bundles_post_ra>
// kernel: tpu_custom_call.1
= control target key start
LH: loop header
LB: loop body
LE: loop exit
PB: predicated region body
PF: predicated region fallthrough
CT: control target
= control target key end

     0   :  { %10 = vsyncpa [#allocation3], 0  ;;  %s1354_s0 = inlined_call_operand.hbm [shape: f32[16,64], index: 0, kind: input, shape index: {}]   ;;  %s1355_s1 = inlined_call_operand.hbm [shape: f32[64,128], index: 1, kind: input, shape index: {}]   ;;  %s1356_s2 = inlined_call_operand.hbm [shape: f32[16,16], index: 2, kind: input, shape index: {}]   ;;  %s1357_s3 = inlined_call_operand.vmem [shape: f32[1,64], index: 3, kind: input, shape index: {}]   ;;  %s1358_s4 = inlined_call_operand.hbm [shape: f32[64,64], index: 4, kind: input, shape index: {}]   ;;  %s1359_s5 = inlined_call_operand.hbm [shape: f32[16,64], index: 5, kind: output, shape index: {}]  }
   0x1   :  { %11 = vsyncpa [#allocation6], 0 }
   0x2   :  { %12 = vsyncpa [#allocation9], 0 }
   0x3   :  { %13 = vsyncpa [#allocation4], 0  ;;  %s1168_s18 = smov [#allocation5]   ;;  %s1169_s20 = smov [#allocation2]  }
   0x4   :  { %s31_s19 = sshll.u32 %s1168_s18, 4  ;;  %s19_s21 = sshll.u32 %s1169_s20, 4  ;;  %s32_s19 = int_to_ptr.vmem [resolvable:$true] %s31_s19  ;;  %s1208_s21 = int_to_ptr.vmem [resolvable:$true] %s19_s21 }
   0x5   :  { %s1050_s24 = scalar_lea.hbm %s1355_s1, 1024 }
   0x6   :  { %p1051_p0 = scmp.ne.s32.totalorder %s1355_s1, %s1050_s24  ;;  %p1054_p1 = scmp.lt.u32.totalorder %s1050_s24, %s1355_s1 }
   0x8   :  { %p1056_p2 = pnand %p1054_p1, %p1051_p0 }
   0xa   :  { %1059 = shalt.err (!%p1056_p2)
}
   0xb   :  { %s1060_s29 = scalar_lea.vmem %s32_s19, 1024  ;;  %p1065_p4 = scmp.lt.s32.totalorder %s32_s19, %s32_s19 }
   0xc   :  { %p1061_p3 = scmp.ne.s32.totalorder %s32_s19, %s1060_s29  ;;  %p1066_p5 = scmp.lt.s32.totalorder %s1060_s29, %s1060_s29 }
   0xe   :  { %p1067_p6 = por %p1066_p5, %p1065_p4 }
  0x10   :  { %p1068_p7 = pnand %p1067_p6, %p1061_p3 }
  0x12   :  { %1071 = shalt.err (!%p1068_p7)
}
  0x13   :  { %s1170_s30 = smov 128   ;;  %s1171_s6 = smov 8  }
  0x14   :  { %37 = dma.hbm_to_vmem [thread:$0]  %s1355_s1, 1024, %s32_s19, [#allocation6], %s1170_s30, %s1170_s30, %s1171_s6  }
  0x15   :  { %s1072_s11 = scalar_lea.hbm %s1354_s0, 256 }
  0x16   :  { %p1073_p8 = scmp.ne.s32.totalorder %s1354_s0, %s1072_s11  ;;  %p1076_p9 = scmp.lt.u32.totalorder %s1072_s11, %s1354_s0 }
  0x18   :  { %p1078_p10 = pnand %p1076_p9, %p1073_p8 }
  0x1a   :  { %1081 = shalt.err (!%p1078_p10)
}
  0x1b   :  { %s1082_s16 = scalar_lea.vmem %s1208_s21, 256  ;;  %p1087_p12 = scmp.lt.s32.totalorder %s1208_s21, %s1208_s21 }
  0x1c   :  { %p1083_p11 = scmp.ne.s32.totalorder %s1208_s21, %s1082_s16  ;;  %p1088_p13 = scmp.lt.s32.totalorder %s1082_s16, %s1082_s16 }
  0x1e   :  { %p1089_p0 = por %p1088_p13, %p1087_p12 }
  0x20   :  { %p1090_p1 = pnand %p1089_p0, %p1083_p11 }
  0x22   :  { %1093 = shalt.err (!%p1090_p1)
}
  0x23   :  { %25 = dma.hbm_to_vmem [thread:$0]  %s1354_s0, 256, %s1208_s21, [#allocation3], %s1170_s30, %s1170_s30, %s1171_s6  }
  0x24   :  { %s1172_s18 = smov [#allocation7]   ;;  %s1173_s20 = smov [#allocation8]  }
  0x25   :  { %s43_s19 = sshll.u32 %s1172_s18, 4  ;;  %s57_s22 = sshll.u32 %s1173_s20, 4  ;;  %s44_s19 = int_to_ptr.vmem [resolvable:$true] %s43_s19  ;;  %s1245_s22 = int_to_ptr.vmem [resolvable:$true] %s57_s22 }
  0x26   :  { %s1094_s25 = scalar_lea.hbm %s1356_s2, 256 }
  0x27   :  { %p1095_p2 = scmp.ne.s32.totalorder %s1356_s2, %s1094_s25  ;;  %p1098_p3 = scmp.lt.u32.totalorder %s1094_s25, %s1356_s2 }
  0x29   :  { %p1100_p4 = pnand %p1098_p3, %p1095_p2 }
  0x2b   :  { %1103 = shalt.err (!%p1100_p4)
}
  0x2c   :  { %s1104_s0 = scalar_lea.vmem %s44_s19, 256  ;;  %p1109_p6 = scmp.lt.s32.totalorder %s44_s19, %s44_s19 }
  0x2d   :  { %p1105_p5 = scmp.ne.s32.totalorder %s44_s19, %s1104_s0  ;;  %p1110_p7 = scmp.lt.s32.totalorder %s1104_s0, %s1104_s0 }
  0x2f   :  { %p1111_p8 = por %p1110_p7, %p1109_p6 }
  0x31   :  { %p1112_p9 = pnand %p1111_p8, %p1105_p5 }
  0x33   :  { %1115 = shalt.err (!%p1112_p9)
}
  0x34   :  { %49 = dma.hbm_to_vmem [thread:$0]  %s1356_s2, 256, %s44_s19, [#allocation6], %s1170_s30, %s1170_s30, %s1171_s6  }
  0x35   :  { %s1116_s10 = scalar_lea.hbm %s1358_s4, 1024 }
  0x36   :  { %p1117_p10 = scmp.ne.s32.totalorder %s1358_s4, %s1116_s10  ;;  %p1120_p11 = scmp.lt.u32.totalorder %s1116_s10, %s1358_s4 }
  0x38   :  { %p1122_p12 = pnand %p1120_p11, %p1117_p10 }
  0x3a   :  { %1125 = shalt.err (!%p1122_p12)
}
  0x3b   :  { %s1126_s15 = scalar_lea.vmem %s1245_s22, 1024  ;;  %p1131_p0 = scmp.lt.s32.totalorder %s1245_s22, %s1245_s22 }
  0x3c   :  { %p1127_p13 = scmp.ne.s32.totalorder %s1245_s22, %s1126_s15  ;;  %p1132_p1 = scmp.lt.s32.totalorder %s1126_s15, %s1126_s15 }
  0x3e   :  { %p1133_p2 = por %p1132_p1, %p1131_p0 }
  0x40   :  { %p1134_p3 = pnand %p1133_p2, %p1127_p13 }
  0x42   :  { %1137 = shalt.err (!%p1134_p3)
}
  0x43   :  { %63 = dma.hbm_to_vmem [thread:$0]  %s1358_s4, 1024, %s1245_s22, [#allocation9], %s1170_s30, %s1170_s30, %s1171_s6  }
  0x44   :  { %1160 = dma.done.wait [#allocation3], 256  }
  0x45   :  { %1161 = vsyncadd [#allocation3], 4294967040 }
  0x46   :  { %1162 = dma.done.wait [#allocation6], 1280  }
  0x47   :  { %1163 = vsyncadd [#allocation6], 4294966016 }
  0x48   :  { %1164 = dma.done.wait [#allocation9], 1024  }
  0x49   :  { %1165 = vsyncadd [#allocation9], 4294966272  ;;  %v78_v0 = vld [vmem:[#allocation5] sm:$0xff]  ;;  %v79_v1 = vld [vmem:[#allocation5 + $0x8] sm:$0xff]  ;;  %vm86_vm0 = vcmask 523264   ;;  %vm200_vm1 = vcmask 130048  }
  0x4a   :  { %v80_v2 = vld [vmem:[#allocation5 + $0x10] sm:$0xff]  ;;  %v945_v3 = vpack.c.bf16 %v79_v1, %v78_v0  ;;  %v81_v4 = vld [vmem:[#allocation5 + $0x18] sm:$0xff]  ;;  %v82_v6 = vld [vmem:[#allocation5 + $0x20] sm:$0xff]  ;;  %s1174_s4 = smov 64   ;;  %vm310_vm2 = vcmask 261120   ;;  %s1175_s1 = smov 32  }
  0x4b   :  { %v949_v5 = vpack.c.bf16 %v81_v4, %v80_v2  ;;  %v83_v7 = vld [vmem:[#allocation5 + $0x28] sm:$0xff]  ;;  %v76_v8 = vld [vmem:[#allocation2] sm:$0xff]  ;;  %v85_v11 = vld [vmem:[#allocation5 + $0x38] sm:$0xff]  ;;  %s1176_s17 = smov 96   ;;  %s1177_s20 = smov [#allocation10]  }
  0x4c   :  { %946 = vmatprep.subr.bf16.mxu0 %v945_v3  ;;  %888 = vmatprep.mubr.msk.f32.mxu0 %vm86_vm0, %v76_v8  ;;  %v953_v9 = vpack.c.bf16 %v83_v7, %v82_v6  ;;  %v84_v10 = vld [vmem:[#allocation5 + $0x30] sm:$0xff]  ;;  %v77_v13 = vld [vmem:[#allocation2 + $0x8] sm:$0xff]  ;;  %v1292_v27 = vld [vmem:[#allocation7] sm:$0xff]  ;;  %s797_s22 = sshll.u32 %s1177_s20, 4  ;;  %s798_s22 = int_to_ptr.vmem [resolvable:$true] %s797_s22 }
  0x4d   :  { %948 = vmatpush3.bf16.msra.mxu0 %v945_v3  ;;  %v957_v12 = vpack.c.bf16 %v85_v11, %v84_v10  ;;  %v1297_v37 = vld [vmem:[#allocation7 + $0x8] sm:$0xff]  ;;  %vm966_vm3 = vmpackc.low %vm310_vm2, %vm310_vm2  ;;  %s1138_s23 = scalar_lea.vmem %s798_s22, 256  ;;  %p1143_p5 = scmp.lt.s32.totalorder %s798_s22, %s798_s22 }
  0x4e   :  { %950 = vmatprep.subr.bf16.mxu0 %v949_v5  ;;  %p1139_p4 = scmp.ne.s32.totalorder %s798_s22, %s1138_s23  ;;  %p1144_p6 = scmp.lt.s32.totalorder %s1138_s23, %s1138_s23 }
  0x50   :  { %p1145_p7 = por %p1144_p6, %p1143_p5 }
  0x51   :  { %952 = vmatpush3.bf16.msra.mxu0 %v949_v5 }
  0x52   :  { %954 = vmatprep.subr.bf16.mxu0 %v953_v9  ;;  %p1146_p8 = pnand %p1145_p7, %p1139_p4 }
  0x55   :  { %956 = vmatpush3.bf16.msra.mxu0 %v953_v9 }
  0x56   :  { %958 = vmatprep.subr.bf16.mxu0 %v957_v12 }
  0x59   :  { %960 = vmatpush3.bf16.msra.mxu0 %v957_v12 }
  0x5c   :  { %889 = vmatmul.mubr.msk.f32.vlgmr.msra.gmra.mrb[0].mxu0 %vm86_vm0, %v77_v13 }
  0x5d   :  { %895 = vmatprep.mubr.msk.f32.mxu0 %vm200_vm1, %v1292_v27 }
 0x12f   :  { %v1284_v14 = vpop.f32.mrb[0].mxu0 }
 0x130   :  { %v814_v15 = vmul.f32 -1.442695, %v1284_v14  ;;  %v1287_v16 = vpop.f32.mrb[1].mxu0  ;;  %v169_v57 = vmax.f32 %v1284_v14, 0.0 }
 0x131   :  { %v1021_v17 = vpack.i.bf16 %v1284_v14, %v1287_v16  ;;  %v813_v18 = vmul.f32 -1.442695, %v1287_v16  ;;  %v168_v46 = vmax.f32 %v1287_v16, 0.0 }
 0x132   :  { %1026 = vpow2.f32 %v814_v15  ;;  %v171_v62 = vmul.f32 0.17677669, %v169_v57 }
 0x133   :  { %1028 = vpow2.f32 %v813_v18  ;;  %v170_v47 = vmul.f32 0.17677669, %v168_v46 }
 0x13c   :  { %v1027_v19 = vpop.eup %1026 }
 0x13d   :  { %v1029_v20 = vpop.eup %1028  ;;  %v179_v21 = vadd.f32 1.0, %v1027_v19 }
 0x13e   :  { %v178_v22 = vadd.f32 1.0, %v1029_v20 }
 0x13f   :  { %1030 = vrcp.f32 %v179_v21 }
 0x140   :  { %1032 = vrcp.f32 %v178_v22 }
 0x149   :  { %v1031_v23 = vpop.eup %1030 }
 0x14a   :  { %v1033_v24 = vpop.eup %1032  ;;  %v187_v25 = vsub.f32 1.0, %v1031_v23 }
 0x14b   :  { %v186_v26 = vsub.f32 1.0, %v1033_v24 }
 0x14c   :  { %1034 = vlog2.f32 %v187_v25 }
 0x14d   :  { %1036 = vlog2.f32 %v186_v26 }
 0x156   :  { %v1035_v28 = vpop.eup %1034 }
 0x157   :  { %v1037_v29 = vpop.eup %1036  ;;  %v191_v30 = vmul.f32 0.6931472, %v1035_v28 }
 0x158   :  { %v189_v31 = vmul.f32 0.6931472, %v1037_v29 }
 0x15a   :  { %v1011_v32 = vpack.i.bf16 %v191_v30, %v189_v31  ;;  %v701_v31 = vld [vmem:[#allocation8] sm:$0xff] }
 0x15c   :  { %1012 = vrot.lane.b32.xlu0 %v1011_v32, %s1174_s4  ;;  %v702_v32 = vld [vmem:[#allocation8 + $0x8] sm:$0xff] }
 0x1ce   :  { %v1013_v33 = vpop.permute.xlu0 %1012 }
 0x1cf   :  { %v1015_v34 = vunpack.i.h.bf16 %v1013_v33  ;;  %v1014_v35 = vunpack.i.l.bf16 %v1013_v33  ;;  %v985_v33 = vpack.c.bf16 %v702_v32, %v701_v31 }
 0x1d1   :  { %v961_v36 = vpack.c.bf16 %v1015_v34, %v1014_v35  ;;  %v703_v34 = vld [vmem:[#allocation8 + $0x10] sm:$0xff]  ;;  %v704_v35 = vld [vmem:[#allocation8 + $0x18] sm:$0xff] }
 0x1d3   :  { %962 = vmatprep.subr.bf16.mxu0 %v961_v36 }
 0x1d4   :  { %964 = vmatpush3.bf16.msra.mxu0 %v961_v36  ;;  %v705_v36 = vld [vmem:[#allocation8 + $0x20] sm:$0xff] }
 0x1d7   :  { %896 = vmatmul.mubr.msk.f32.vlgmr.msra.gmra.mrb[2].mxu0 %vm200_vm1, %v1297_v37 }
 0x2aa   :  { %v897_v38 = vpop.f32.mrb[2].mxu0 }
 0x2ab   :  { %v287_v39 = vsub.f32 0.0, %v897_v38  ;;  %v273_v40 = vpop.f32.mrb[3].mxu0  ;;  %v284_v45 = vmul.f32 1.442695, %v897_v38  ;;  %v706_v38 = vld [vmem:[#allocation8 + $0x28] sm:$0xff] }
 0x2ac   :  { %v282_v41 = vmul.f32 1.442695, %v273_v40  ;;  %v286_v42 = vsub.f32 0.0, %v273_v40  ;;  %v707_v40 = vld [vmem:[#allocation8 + $0x30] sm:$0xff] }
 0x2ad   :  { %v290_v43 = vmul.f32 1.442695, %v287_v39  ;;  %v993_v39 = vpack.c.bf16 %v706_v38, %v705_v36 }
 0x2ae   :  { %1038 = vpow2.f32 %v282_v41  ;;  %v288_v44 = vmul.f32 1.442695, %v286_v42  ;;  %v708_v41 = vld [vmem:[#allocation8 + $0x38] sm:$0xff] }
 0x2af   :  { %1040 = vpow2.f32 %v290_v43  ;;  %v997_v42 = vpack.c.bf16 %v708_v41, %v707_v40 }
 0x2b0   :  { %1042 = vpow2.f32 %v288_v44 }
 0x2b1   :  { %1044 = vpow2.f32 %v284_v45 }
 0x2b8   :  { %v1039_v48 = vpop.eup %1038 }
 0x2b9   :  { %v1041_v49 = vpop.eup %1040  ;;  %v302_v50 = vmul.f32 %v1039_v48, %v170_v47 }
 0x2ba   :  { %v1043_v51 = vpop.eup %1042  ;;  %296 = vrot.lane.b32.xlu1 %v1041_v49, %s1174_s4 }
 0x2bb   :  { %294 = vrot.lane.b32.xlu0 %v1043_v51, %s1174_s4  ;;  %902 = vmatprep.mubr.msk.f32.mxu1 %vm310_vm2, %v302_v50  ;;  %v1045_v52 = vpop.eup %1044 }
 0x2bc   :  { %v303_v9 = vmul.f32 %v1045_v52, %v171_v62 }
 0x2be   :  { %489 = vrot.lane.b32.xlu1 %v1039_v48, %s1175_s1 }
 0x2bf   :  { %491 = vrot.lane.b32.xlu0 %v1045_v52, %s1175_s1  ;;  %v829_v52 = vld [vmem:[%s1357_s3] ss:$0 sm:$0xff] }
 0x32c   :  { %v297_v53 = vpop.permute.xlu1 %296 }
 0x32d   :  { %v301_v54 = vmul.f32 %v1031_v23, %v297_v53  ;;  %v295_v55 = vpop.permute.xlu0 %294 }
 0x32e   :  { %v300_v56 = vmul.f32 %v1033_v24, %v295_v55 }
 0x330   :  { %v1016_v58 = vpack.i.bf16 %v301_v54, %v300_v56  ;;  %v490_v59 = vpop.permute.xlu1 %489 }
 0x331   :  { %v495_v60 = vmul.f32 %v490_v59, %v170_v47  ;;  %v492_v61 = vpop.permute.xlu0 %491 }
 0x332   :  { %1017 = vrot.lane.b32.xlu1 %v1016_v58, %s1174_s4  ;;  %v496_v63 = vmul.f32 %v492_v61, %v171_v62 }
 0x333   :  { %499 = vrot.lane.b32.xlu0 %v495_v60, %s1176_s17 }
 0x336   :  { %501 = vrot.lane.b32.xlu1 %v496_v63, %s1176_s17 }
 0x337   :  { %1022 = vrot.lane.b32.xlu0 %v1021_v17, %s1175_s1 }
 0x3a4   :  { %v1018_v0 = vpop.permute.xlu1 %1017 }
 0x3a5   :  { %v1020_v1 = vunpack.i.h.bf16 %v1018_v0  ;;  %v1019_v2 = vunpack.i.l.bf16 %v1018_v0  ;;  %v500_v3 = vpop.permute.xlu0 %499 }
 0x3a6   :  { %916 = vmatprep.mubr.msk.f32.mxu0 %vm310_vm2, %v500_v3 }
 0x3a7   :  { %v965_v4 = vpack.c.bf16 %v1020_v1, %v1019_v2 }
 0x3a8   :  { %v502_v10 = vpop.permute.xlu1 %501 }
 0x3a9   :  { %967 = vmatprep.subr.msk.bf16.mxu1 %vm966_vm3, %v965_v4  ;;  %977 = vmatprep.subr.msk.bf16.mxu0 %vm966_vm3, %v965_v4  ;;  %v1023_v5 = vpop.permute.xlu0 %1022 }
 0x3aa   :  { %v1025_v6 = vunpack.i.h.bf16 %v1023_v5  ;;  %v1024_v7 = vunpack.i.l.bf16 %v1023_v5  ;;  %970 = vmatpush3.bf16.xpose.msk.msra.mxu1 %vm966_vm3, %v965_v4  ;;  %980 = vmatpush3.bf16.xpose.msk.msra.mxu0 %vm966_vm3, %v965_v4 }
 0x3ac   :  { %v971_v8 = vpack.c.bf16 %v1025_v6, %v1024_v7 }
 0x3ae   :  { %972 = vmatprep.subr.bf16.mxu1 %v971_v8 }
 0x3b1   :  { %903 = vmatmul.mubr.msk.f32.vlgmr.msra.gmra.mrb[0].mxu1 %vm310_vm2, %v303_v9  ;;  %917 = vmatmul.mubr.msk.f32.vlgmr.msra.gmra.mrb[4].mxu0 %vm310_vm2, %v502_v10 }
 0x3b2   :  { %974 = vmatpush3.bf16.msra.mxu1 %v971_v8 }
 0x3b3   :  { %982 = vmatprep.subr.bf16.mxu1 %v971_v8 }
 0x484   :  { %v904_v11 = vpop.f32.mrb[0].mxu1  ;;  %v918_v12 = vpop.f32.mrb[4].mxu0 }
 0x485   :  { %v387_v13 = vpop.f32.mrb[1].mxu1  ;;  %v573_v14 = vpop.f32.mrb[5].mxu0  ;;  %v397_v16 = vmul.f32 %v904_v11, %v1297_v37  ;;  %v583_v18 = vmul.f32 %v918_v12, %v1297_v37  ;;  %v989_v37 = vpack.c.bf16 %v704_v35, %v703_v34 }
 0x486   :  { %v396_v15 = vmul.f32 %v387_v13, %v1292_v27  ;;  %v582_v17 = vmul.f32 %v573_v14, %v1292_v27 }
 0x488   :  { %909 = vmatprep.mubr.msk.f32.mxu1 %vm200_vm1, %v396_v15 }
 0x489   :  { %910 = vmatmul.mubr.msk.f32.vlgmr.msra.gmra.mrb[2].mxu1 %vm200_vm1, %v397_v16 }
 0x48a   :  { %984 = vmatpush3.bf16.msra.mxu1 %v971_v8  ;;  %923 = vmatprep.mubr.msk.f32.mxu1 %vm200_vm1, %v582_v17 }
 0x48b   :  { %986 = vmatprep.subr.bf16.mxu1 %v985_v33 }
 0x48d   :  { %924 = vmatmul.mubr.msk.f32.vlgmr.msra.gmra.mrb[4].mxu1 %vm200_vm1, %v583_v18 }
 0x48e   :  { %988 = vmatpush3.bf16.msra.mxu1 %v985_v33 }
 0x48f   :  { %990 = vmatprep.subr.bf16.mxu1 %v989_v37 }
 0x492   :  { %992 = vmatpush3.bf16.msra.mxu1 %v989_v37 }
 0x493   :  { %994 = vmatprep.subr.bf16.mxu1 %v993_v39 }
 0x496   :  { %996 = vmatpush3.bf16.msra.mxu1 %v993_v39 }
 0x497   :  { %998 = vmatprep.subr.bf16.mxu1 %v997_v42 }
 0x49a   :  { %1000 = vmatpush3.bf16.msra.mxu1 %v997_v42 }
 0x55c   :  { %v911_v19 = vpop.f32.mrb[2].mxu1 }
 0x55d   :  { %v478_v20 = vpop.f32.mrb[3].mxu1 }
 0x560   :  { %v925_v21 = vpop.f32.mrb[4].mxu1 }
 0x561   :  { %669 = vrot.lane.b32.xlu0 %v925_v21, %s1175_s1  ;;  %v656_v22 = vpop.f32.mrb[5].mxu1 }
 0x562   :  { %667 = vrot.lane.b32.xlu1 %v656_v22, %s1175_s1 }
 0x5d3   :  { %v670_v23 = vpop.permute.xlu0 %669 }
 0x5d4   :  { %v674_v24 = vsel %vm310_vm2, %v911_v19, %v670_v23  ;;  %v668_v25 = vpop.permute.xlu1 %667 }
 0x5d5   :  { %v673_v26 = vsel %vm310_vm2, %v478_v20, %v668_v25  ;;  %v676_v27 = vmul.f32 %v674_v24, %v674_v24 }
 0x5d6   :  { %v675_v28 = vmul.f32 %v673_v26, %v673_v26 }
 0x5d7   :  { %v680_v29 = vsel %vm86_vm0, %v676_v27, 0.0 }
 0x5d8   :  { %681 = vadd.xlane.f32.xlu0 %v680_v29  ;;  %v677_v30 = vsel %vm86_vm0, %v675_v28, 0.0 }
 0x5d9   :  { %678 = vadd.xlane.f32.xlu1 %v677_v30 }
 0x665   :  { %v682_v43 = vpop.xlane.xlu0 %681 }
 0x666   :  { %v685_v44 = vmul.f32 0.015625, %v682_v43  ;;  %v679_v45 = vpop.xlane.xlu1 %678 }
 0x667   :  { %v684_v46 = vmul.f32 0.015625, %v679_v45 }
 0x668   :  { %v687_v47 = vadd.f32 1e-05, %v685_v44 }
 0x669   :  { %v686_v48 = vadd.f32 1e-05, %v684_v46 }
 0x66a   :  { %1046 = vrsqrt.f32 %v687_v47 }
 0x66b   :  { %1048 = vrsqrt.f32 %v686_v48 }
 0x674   :  { %v1047_v49 = vpop.eup %1046 }
 0x675   :  { %v1049_v50 = vpop.eup %1048  ;;  %v691_v51 = vmul.f32 %v1047_v49, %v674_v24 }
 0x676   :  { %v690_v53 = vmul.f32 %v1049_v50, %v673_v26 }
 0x677   :  { %v700_v55 = vmul.f32 %v829_v52, %v691_v51 }
 0x678   :  { %v699_v54 = vmul.f32 %v829_v52, %v690_v53 }
 0x67a   :  { %942 = vmatprep.mubr.msk.f32.mxu1 %vm86_vm0, %v699_v54 }
 0x67b   :  { %943 = vmatmul.mubr.msk.f32.vlgmr.msra.gmra.mrb[6].mxu1 %vm86_vm0, %v700_v55 }
 0x74e   :  { %v944_v56 = vpop.f32.mrb[6].mxu1 }
 0x74f   :  { %791 = vst.msk [vmem:[#allocation10 + $0x8] sm:$0xff] %vm86_vm0, %v944_v56  ;;  %v781_v57 = vpop.f32.mrb[7].mxu1 }
 0x750   :  { %790 = vst.msk [vmem:[#allocation10] sm:$0xff] %vm86_vm0, %v781_v57 }
 0x751   :  { %1149 = shalt.err (!%p1146_p8)
}
 0x752   :  { %s1150_s25 = scalar_lea.hbm %s1359_s5, 256 }
 0x753   :  { %p1151_p9 = scmp.ne.s32.totalorder %s1359_s5, %s1150_s25  ;;  %p1154_p10 = scmp.lt.u32.totalorder %s1150_s25, %s1359_s5 }
 0x755   :  { %p1156_p11 = pnand %p1154_p10, %p1151_p9 }
 0x757   :  { %1159 = shalt.err (!%p1156_p11)
}
 0x758   :  { %803 = dma.vmem_to_hbm [thread:$0]  %s798_s22, 256, %s1359_s5, [#allocation4], %s1170_s30, %s1170_s30, %s1171_s6  }
 0x759   :  { %1166 = dma.done.wait [#allocation4], 256  }
 0x75a   :  { %1167 = vsyncadd [#allocation4], 4294967040 }
 0x75b   :  { %807 = vsyncpa [#allocation3], 1 }
 0x75c   :  { %808 = vsyncpa [#allocation6], 1 }
 0x75d   :  { %809 = vsyncpa [#allocation9], 1 }
 0x75e   :  { %810 = vsyncpa [#allocation4], 1 }

</bundles_post_ra>
